<compile_context>
chip_gen: v7x
topology: tpu7x:2x2x1
jax: 0.10.0
libtpu: 0.0.40
codegen_flags: <defaults>
</compile_context>

<pallas_src>
import functools
import math

import jax
import jax.numpy as jnp
from jax.experimental import pallas as pl
from jax.experimental.pallas import tpu as pltpu

_LANE = 128


def next_power_of2(x: int) -> int:
    # Same semantics as hannah's next_power_of2 helper.
    return 1 if x <= 1 else 2 ** math.ceil(math.log2(x))


def _round_up(x: int, m: int) -> int:
    return ((x + m - 1) // m) * m


def _gap_kernel(x_ref, o_ref, acc_ref, *, inv_divisor, lane_chunks):
    """Processes one (TR, TL) tile of the flattened (rows, L) input.

    Grid = (row_blocks, length_blocks); the length axis (k) is a reduction
    carried in the float32 VMEM accumulator `acc_ref`.
    """
    k = pl.program_id(1)

    @pl.when(k == 0)
    def _init():
        acc_ref[...] = jnp.zeros_like(acc_ref)

    if lane_chunks >= 1:
        # TL is a multiple of 128: fold the lane axis into 128 running per-lane
        # partial sums using only VPU adds (lane-aligned static slices are free
        # vreg selects; no per-step XLU cross-lane reduce).  Pairs of chunks per
        # accumulator update halve the VMEM round-trips on the accumulator.
        for j in range(0, lane_chunks, 2):
            chunk = x_ref[:, j * _LANE:(j + 1) * _LANE].astype(jnp.float32)
            if j + 1 < lane_chunks:
                chunk = chunk + x_ref[:, (j + 1) * _LANE:(j + 2) * _LANE].astype(
                    jnp.float32)
            acc_ref[...] += chunk
    else:
        # Short / lane-unaligned length (single block): plain masked reduce.
        acc_ref[...] += jnp.sum(
            x_ref[...].astype(jnp.float32), axis=-1, keepdims=True)

    @pl.when(k == pl.num_programs(1) - 1)
    def _finalize():
        # One cross-lane (XLU) reduce per output row block, scale, cast, store.
        s = jnp.sum(acc_ref[...], axis=-1, keepdims=True)
        o_ref[...] = (s * inv_divisor).astype(o_ref.dtype)


def approximate_global_average_pooling_1d(x: jax.Array, size: int) -> jax.Array:
    """Pallas TPU implementation of ApproximateGlobalAveragePooling1D.

    x: (N, C, L) array.  Returns (N, C, 1) = sum(x, axis=2, keepdims=True) /
    next_power_of2(size).
    """
    n, c, l = x.shape
    assert l == size, f"expected length {size}, got {l}"
    divisor = next_power_of2(size)
    inv_divisor = 1.0 / float(divisor)

    rows = n * c
    xf = x.reshape(rows, l)                 # free for NCL (row-major) layout
    itemsize = xf.dtype.itemsize
    sublane = {4: 8, 2: 16, 1: 32}.get(itemsize, 8)

    # ---- per-generation VMEM budget (v7x: 64 MiB, v5e/v6e: 128 MiB) ----
    try:
        info = pltpu.get_tpu_info()
        vmem_bytes = int(getattr(info, "vmem_capacity_bytes", 64 * 2**20))
    except Exception:  # interpret mode / lookup failure: conservative default
        vmem_bytes = 64 * 2**20
    # One input block; the pipeline double-buffers it.
    block_budget = min(vmem_bytes // 8, 16 * 2**20)

    # ---- length (lane-axis) tile ----
    l_p = l
    if l % _LANE != 0 and l > 4096:
        l_p = _round_up(l, _LANE)           # pad long, unaligned lengths
    if l_p % _LANE == 0:
        tl = min(l_p, 2048)
        while l_p % tl != 0:                # keep a 128-multiple divisor of L
            tl -= _LANE
    else:
        tl = l_p                            # full extent (full-dim rule)
    lane_chunks = tl // _LANE if tl % _LANE == 0 else 0

    # ---- row (sublane-axis) tile ----
    tr = (block_budget // (tl * itemsize)) // sublane * sublane
    tr = max(sublane, min(tr, 2048))
    if rows <= tr:
        tr = rows                           # full extent (full-dim rule)
        rows_p = rows
    else:
        rows_p = _round_up(rows, tr)

    if rows_p != rows or l_p != l:
        # Zero padding does not change the sums; padded rows are sliced off.
        xf = jnp.pad(xf, ((0, rows_p - rows), (0, l_p - l)))

    acc_width = _LANE if lane_chunks >= 1 else 1
    grid = (rows_p // tr, l_p // tl)
    block_bytes = tr * tl * itemsize

    kernel = functools.partial(
        _gap_kernel, inv_divisor=inv_divisor, lane_chunks=lane_chunks)

    out = pl.pallas_call(
        kernel,
        out_shape=jax.ShapeDtypeStruct((rows_p, 1), x.dtype),
        grid_spec=pltpu.PrefetchScalarGridSpec(
            num_scalar_prefetch=0,
            grid=grid,
            in_specs=[pl.BlockSpec((tr, tl), lambda i, k: (i, k))],
            out_specs=pl.BlockSpec((tr, 1), lambda i, k: (i, 0)),
            scratch_shapes=[pltpu.VMEM((tr, acc_width), jnp.float32)],
        ),
        compiler_params=pltpu.CompilerParams(
            dimension_semantics=("parallel", "arbitrary"),
            vmem_limit_bytes=int(
                min(vmem_bytes * 3 // 4,
                    max(32 * 2**20, 3 * block_bytes + 2 * 2**20))),
        ),
        cost_estimate=pl.CostEstimate(
            flops=rows_p * l_p + rows_p,
            transcendentals=0,
            bytes_accessed=rows_p * l_p * itemsize + rows_p * itemsize,
        ),
    )(xf)

    return out[:rows].reshape(n, c, 1)


if __name__ == "__main__":
    key = jax.random.PRNGKey(0)

    # Primary small case consistent with the module (N, C, L).
    batch, channels, length = 2, 4, 16
    x = jax.random.normal(key, (batch, channels, length), dtype=jnp.float32)
    out = jax.block_until_ready(
        approximate_global_average_pooling_1d(x, size=length))
    ref = jnp.sum(x, axis=2, keepdims=True) / next_power_of2(length)
    assert out.shape == (batch, channels, 1), out.shape
    assert jnp.allclose(out, ref, atol=1e-5, rtol=1e-5), "mismatch vs reference"

    # Exercise the lane-chunked VPU path and the L-axis accumulator path.
    for (b2, c2, l2) in [(2, 64, 384), (2, 16, 4096)]:
        k2 = jax.random.fold_in(key, l2)
        x2 = jax.random.normal(k2, (b2, c2, l2), dtype=jnp.float32)
        o2 = jax.block_until_ready(
            approximate_global_average_pooling_1d(x2, size=l2))
        r2 = jnp.sum(x2, axis=2, keepdims=True) / next_power_of2(l2)
        assert o2.shape == (b2, c2, 1), o2.shape
        assert jnp.allclose(o2, r2, atol=1e-4, rtol=1e-4), (b2, c2, l2)

    print("KERNEL_OK")
</pallas_src>

<mosaic_0001>
module attributes {stable_mosaic.version = 11 : i64} {
  func.func @_gap_kernel(%arg0: i32, %arg1: i32, %arg2: memref<8x16xf32, #tpu.memory_space<vmem>>, %arg3: memref<8x1xf32, #tpu.memory_space<vmem>>, %arg4: memref<8x1xf32, #tpu.memory_space<vmem>>) attributes {dimension_semantics = [#tpu.dimension_semantics<parallel>, #tpu.dimension_semantics<arbitrary>], iteration_bounds = array<i64: 1, 1>, scalar_prefetch = 0 : i64, scratch_operands = 1 : i64, tpu.core_type = #tpu.core_type<tc>, window_params = [{transform_indices = @transform_0, window_bounds = array<i64: 8, 16>}, {transform_indices = @transform_1, window_bounds = array<i64: 8, 1>}]} {
    %c0_i32 = arith.constant 0 : i32
    %0 = arith.cmpi eq, %arg1, %c0_i32 : i32
    %1 = arith.extui %0 : i1 to i32
    %c0_i32_0 = arith.constant 0 : i32
    %2 = arith.cmpi ne, %1, %c0_i32_0 : i32
    scf.if %2 {
      %cst_8 = arith.constant 0.000000e+00 : f32
      %12 = vector.broadcast %cst_8 : f32 to vector<8x1xf32>
      %c0_9 = arith.constant 0 : index
      %c0_10 = arith.constant 0 : index
      %13 = vector.load %arg4[%c0_9, %c0_10] : memref<8x1xf32, #tpu.memory_space<vmem>>, vector<8x1xf32>
      tpu.vector_store %arg4[%c0_9, %c0_10], %12 {strides = array<i32>} : memref<8x1xf32, #tpu.memory_space<vmem>>, vector<8x1xf32>,
    } else {
    }
    %c0 = arith.constant 0 : index
    %c0_1 = arith.constant 0 : index
    %3 = vector.load %arg4[%c0, %c0_1] : memref<8x1xf32, #tpu.memory_space<vmem>>, vector<8x1xf32>
    %c0_2 = arith.constant 0 : index
    %c0_3 = arith.constant 0 : index
    %4 = vector.load %arg2[%c0_2, %c0_3] : memref<8x16xf32, #tpu.memory_space<vmem>>, vector<8x16xf32>
    %cst = arith.constant dense<0.000000e+00> : vector<8xf32>
    %5 = vector.multi_reduction <add>, %4, %cst [1] : vector<8x16xf32> to vector<8xf32>
    %6 = vector.shape_cast %5 : vector<8xf32> to vector<8x1xf32>
    %7 = arith.addf %3, %6 : vector<8x1xf32>
    %c0_4 = arith.constant 0 : index
    %c0_5 = arith.constant 0 : index
    %8 = vector.load %arg4[%c0_4, %c0_5] : memref<8x1xf32, #tpu.memory_space<vmem>>, vector<8x1xf32>
    tpu.vector_store %arg4[%c0_4, %c0_5], %7 {strides = array<i32>} : memref<8x1xf32, #tpu.memory_space<vmem>>, vector<8x1xf32>,
    %c0_i32_6 = arith.constant 0 : i32
    %9 = arith.cmpi eq, %arg1, %c0_i32_6 : i32
    %10 = arith.extui %9 : i1 to i32
    %c0_i32_7 = arith.constant 0 : i32
    %11 = arith.cmpi ne, %10, %c0_i32_7 : i32
    scf.if %11 {
      %c0_8 = arith.constant 0 : index
      %c0_9 = arith.constant 0 : index
      %12 = vector.load %arg4[%c0_8, %c0_9] : memref<8x1xf32, #tpu.memory_space<vmem>>, vector<8x1xf32>
      %cst_10 = arith.constant dense<0.000000e+00> : vector<8xf32>
      %13 = vector.multi_reduction <add>, %12, %cst_10 [1] : vector<8x1xf32> to vector<8xf32>
      %14 = vector.shape_cast %13 : vector<8xf32> to vector<8x1xf32>
      %cst_11 = arith.constant 6.250000e-02 : f32
      %15 = vector.broadcast %cst_11 : f32 to vector<8x1xf32>
      %16 = arith.mulf %14, %15 : vector<8x1xf32>
      %c0_12 = arith.constant 0 : index
      %c0_13 = arith.constant 0 : index
      %17 = vector.load %arg3[%c0_12, %c0_13] : memref<8x1xf32, #tpu.memory_space<vmem>>, vector<8x1xf32>
      tpu.vector_store %arg3[%c0_12, %c0_13], %16 {strides = array<i32>} : memref<8x1xf32, #tpu.memory_space<vmem>>, vector<8x1xf32>,
    } else {
    }
    return
  }
  func.func @transform_0(%arg0: i32, %arg1: i32) -> (i32, i32) {
    %c0_i32 = arith.constant 0 : i32
    return %arg0, %arg1 : i32, i32
  }
  func.func @transform_1(%arg0: i32, %arg1: i32) -> (i32, i32) {
    %c0_i32 = arith.constant 0 : i32
    %c0_i32_0 = arith.constant 0 : i32
    return %arg0, %c0_i32 : i32, i32
  }
}

</mosaic_0001>

<bundles_post_ra>
// kernel: tpu_custom_call.1
= control target key start
LH: loop header
LB: loop body
LE: loop exit
PB: predicated region body
PF: predicated region fallthrough
CT: control target
= control target key end

     0   :  { %6 = vsyncpa [#allocation4], 0  ;;  %s73_s6 = smov [#allocation3]   ;;  %s100_s0 = inlined_call_operand.hbm [shape: f32[8,16], index: 0, kind: input, shape index: {}]   ;;  %s101_s1 = inlined_call_operand.vmem [shape: f32[8,1], index: 1, kind: output, shape index: {}]  }
   0x1   :  { %s13_s7 = sshll.u32 %s73_s6, 4  ;;  %s49_s10 = scalar_lea.hbm %s100_s0, 128  ;;  %s14_s7 = int_to_ptr.vmem [resolvable:$true] %s13_s7 }
   0x2   :  { %p50_p0 = scmp.ne.s32.totalorder %s100_s0, %s49_s10  ;;  %p53_p1 = scmp.lt.u32.totalorder %s49_s10, %s100_s0 }
   0x4   :  { %p55_p2 = pnand %p53_p1, %p50_p0 }
   0x6   :  { %58 = shalt.err (!%p55_p2)
}
   0x7   :  { %s59_s15 = scalar_lea.vmem %s14_s7, 128  ;;  %p64_p4 = scmp.lt.s32.totalorder %s14_s7, %s14_s7 }
   0x8   :  { %p60_p3 = scmp.ne.s32.totalorder %s14_s7, %s59_s15  ;;  %p65_p5 = scmp.lt.s32.totalorder %s59_s15, %s59_s15 }
   0xa   :  { %p66_p6 = por %p65_p5, %p64_p4 }
   0xc   :  { %p67_p7 = pnand %p66_p6, %p60_p3 }
   0xe   :  { %70 = shalt.err (!%p67_p7)
}
   0xf   :  { %16 = dma.hbm_to_vmem [thread:$0]  %s100_s0, 128, %s14_s7, [#allocation4]  }
  0x10   :  { %71 = dma.done.wait [#allocation4], 128  }
  0x11   :  { %72 = vsyncadd [#allocation4], 4294967168  ;;  %vm24_vm0 = vcmask 7168   ;;  %v74_v0 = vmov 0.0   ;;  %vm28_vm1 = vcmask 130048   ;;  %v27_v1 = vld [vmem:[#allocation3] sm:$0xff] }
  0x12   :  { %25 = vst.msk [vmem:[#allocation2] sm:$0xff] %vm24_vm0, %v74_v0  ;;  %v29_v2 = vsel %vm28_vm1, %v27_v1, 0.0 }
  0x13   :  { %30 = vadd.xlane.f32.xlu0 %v29_v2 }
  0x19   :  { %v26_v3 = vld [vmem:[#allocation2] sm:$0xff] }
  0xa0   :  { %v31_v4 = vpop.xlane.xlu0 %30 }
  0xa1   :  { %v32_v5 = vadd.f32 %v31_v4, %v26_v3 }
  0xa3   :  { %34 = vst.msk [vmem:[#allocation2] sm:$0xff] %vm24_vm0, %v32_v5 }
  0xaa   :  { %v38_v6 = vld [vmem:[#allocation2] sm:$0xff] }
  0xab   :  { %v40_v7 = vmul.f32 0.0625, %v38_v6 }
  0xad   :  { %41 = vst.msk [vmem:[%s101_s1] sm:$0xff] %vm24_vm0, %v40_v7 }
  0xae   :  { %46 = vsyncpa [#allocation4], 1 }

</bundles_post_ra>
